<compile_context>
chip_gen: v7x
topology: tpu7x:2x2x1
jax: 0.10.0
libtpu: 0.0.40
codegen_flags: <defaults>
</compile_context>

<pallas_src>
import functools

import jax
import jax.numpy as jnp
from jax import lax
from jax.experimental import pallas as pl
from jax.experimental.pallas import tpu as pltpu

_LANE = 128
_SUBLANE = 8
_ITEMSIZE = 4  # float32


def _round_up(n, m):
    return ((n + m - 1) // m) * m


def _vmem_info():
    """(per-step x-block byte budget, scoped VMEM limit) per TPU generation."""
    try:
        phys = int(pltpu.get_tpu_info().vmem_capacity_bytes)
    except Exception:  # pragma: no cover - conservative fallback
        phys = 64 << 20  # v7x-class per-TensorCore VMEM
    if phys <= (64 << 20):
        # v7x-class: small VMEM but ~3.2 TB/s HBM -> larger steps pay off.
        x_budget = 12 << 20
    else:
        # v5e / v6e: 128 MiB physical VMEM; 8 MiB steps are already ample.
        x_budget = 8 << 20
    vmem_limit = min(48 << 20, (phys * 3) // 4)
    return x_budget, vmem_limit


def _poly_kernel_flat(w_ref, x_ref, o_ref, *, D, Fp):
    # w_ref: (D,) f32 in SMEM; x_ref: (TB, D*Fp) in VMEM; o_ref: (TB, Fp).
    # Each degree slice is a 128-aligned lane slice -> pure VPU, no relayout.
    acc = x_ref[:, 0:Fp] * w_ref[0]
    for d in range(1, D):  # D is small and static -> fully unrolled
        acc = acc + x_ref[:, d * Fp:(d + 1) * Fp] * w_ref[d]
    o_ref[...] = acc.astype(o_ref.dtype)


def _poly_kernel_sliced(w_ref, *refs):
    # refs = (x_0, ..., x_{D-1}, out); each x_d is a lane-dense (TB, TF) slab.
    x_refs, o_ref = refs[:-1], refs[-1]
    acc = x_refs[0][...] * w_ref[0]
    for d in range(1, len(x_refs)):
        acc = acc + x_refs[d][...] * w_ref[d]
    o_ref[...] = acc.astype(o_ref.dtype)


def _forward_flat(x_flat, w, B, D, Fp, x_budget, vmem_limit, cost):
    row_bytes = D * Fp * _ITEMSIZE

    if B <= _SUBLANE:
        TB = B  # full-dim exemption on the sublane axis
    else:
        cap_budget = max(_SUBLANE, (x_budget // row_bytes) // _SUBLANE * _SUBLANE)
        # Aim for >= 4 grid steps (>= 2 per TensorCore on v7x) when B allows,
        # else >= 2, so DMAs double-buffer and megacore sharding has work.
        if B >= 4 * _SUBLANE:
            cap_steps = max(_SUBLANE, (B // 4) // _SUBLANE * _SUBLANE)
        elif B >= 2 * _SUBLANE:
            cap_steps = max(_SUBLANE, (B // 2) // _SUBLANE * _SUBLANE)
        else:
            cap_steps = _SUBLANE
        TB = min(cap_budget, cap_steps)

    grid = (pl.cdiv(B, TB),)
    grid_spec = pltpu.PrefetchScalarGridSpec(
        num_scalar_prefetch=1,  # w -> SMEM, passed first to kernel & index_maps
        grid=grid,
        in_specs=[pl.BlockSpec((TB, D * Fp), lambda i, w_ref: (i, 0))],
        out_specs=pl.BlockSpec((TB, Fp), lambda i, w_ref: (i, 0)),
    )
    return pl.pallas_call(
        functools.partial(_poly_kernel_flat, D=D, Fp=Fp),
        out_shape=jax.ShapeDtypeStruct((B, Fp), x_flat.dtype),
        grid_spec=grid_spec,
        compiler_params=pltpu.CompilerParams(
            dimension_semantics=("parallel",),
            vmem_limit_bytes=vmem_limit,
        ),
        cost_estimate=cost,
    )(w, x_flat)


def _forward_feature_tiled(x_flat, w, B, D, Fp, x_budget, vmem_limit, cost):
    # Used when a whole (>=8 rows x D*Fp) flat block would not fit the budget:
    # tile (batch, feature); every degree slice is still a lane-dense block of
    # the flat array whose lane block index is d * (Fp // TF) + j.
    TB = B if B <= _SUBLANE else _SUBLANE
    max_tf = max(_LANE, (x_budget // (D * TB * _ITEMSIZE)) // _LANE * _LANE)
    TF = min(Fp, max_tf)
    while Fp % TF != 0:  # TF must divide Fp so blocks land on degree boundaries
        TF -= _LANE
    f_blocks = Fp // TF

    grid = (pl.cdiv(B, TB), f_blocks)

    def _x_spec(d):
        return pl.BlockSpec(
            (TB, TF), lambda i, j, w_ref, d=d: (i, d * f_blocks + j)
        )

    grid_spec = pltpu.PrefetchScalarGridSpec(
        num_scalar_prefetch=1,
        grid=grid,
        in_specs=[_x_spec(d) for d in range(D)],
        out_specs=pl.BlockSpec((TB, TF), lambda i, j, w_ref: (i, j)),
    )
    return pl.pallas_call(
        _poly_kernel_sliced,
        out_shape=jax.ShapeDtypeStruct((B, Fp), x_flat.dtype),
        grid_spec=grid_spec,
        compiler_params=pltpu.CompilerParams(
            dimension_semantics=("parallel", "parallel"),
            vmem_limit_bytes=vmem_limit,
        ),
        cost_estimate=cost,
    )(w, *([x_flat] * D))


def polynomial_forward(x, coeffs, *, x_block_budget_bytes=None):
    """x: (B, D, F) float32, coeffs: (D,) float32 -> (B, F) float32."""
    B, D, F = x.shape
    assert coeffs.shape == (D,)

    # w[d] = coeff_d ** d via repeated multiply (matches torch .pow(d) for
    # negative bases; d == 0 -> 1).
    w = jnp.stack(
        [lax.integer_pow(coeffs[d].astype(jnp.float32), d) for d in range(D)]
    )

    x_budget, vmem_limit = _vmem_info()
    if x_block_budget_bytes is not None:
        x_budget = int(x_block_budget_bytes)

    # Lane-align the feature axis (128-aligned degree slices, unmasked stores).
    Fp = _round_up(F, _LANE)
    if Fp != F:
        x = jnp.pad(x, ((0, 0), (0, 0), (0, Fp - F)))
    x_flat = x.reshape(B, D * Fp)  # free: row-major bit-compatible

    cost = pl.CostEstimate(
        flops=2 * B * D * Fp,
        transcendentals=0,
        bytes_accessed=_ITEMSIZE * (B * D * Fp + B * Fp + D),
    )

    row_bytes = D * Fp * _ITEMSIZE
    min_flat_block = min(B, _SUBLANE) * row_bytes
    if min_flat_block <= x_budget:
        out_p = _forward_flat(x_flat, w, B, D, Fp, x_budget, vmem_limit, cost)
    else:
        out_p = _forward_feature_tiled(
            x_flat, w, B, D, Fp, x_budget, vmem_limit, cost
        )

    return out_p if Fp == F else out_p[:, :F]


def _reference(x, coeffs):
    B, D, F = x.shape
    ref = jnp.zeros((B, F), jnp.float32)
    for d in range(D):
        ref = ref + x[:, d] * (coeffs[d] ** d)  # python int exponent -> integer_pow
    return ref


if __name__ == "__main__":
    degree = 7
    D = degree + 1

    key = jax.random.PRNGKey(0)
    kc, kx1, kx2, kx3 = jax.random.split(key, 4)
    # deterministic stand-in for torch.tensor(0.0).normal_() per coefficient
    coeffs = jax.random.normal(kc, (D,), dtype=jnp.float32)

    # Case 1: toy shape from the module's usage -> flat path, single grid step.
    B1, F1 = 2, 128
    x1 = jax.random.normal(kx1, (B1, D, F1), dtype=jnp.float32)
    out1 = jax.block_until_ready(polynomial_forward(x1, coeffs))
    ref1 = _reference(x1, coeffs)
    assert out1.shape == (B1, F1)
    assert jnp.allclose(out1, ref1, atol=1e-5, rtol=1e-5)

    # Case 2: larger batch -> flat path with a 4-step batch grid
    # (double-buffered DMAs; both v7x TensorCores get blocks).
    B2, F2 = 32, 512
    x2 = jax.random.normal(kx2, (B2, D, F2), dtype=jnp.float32)
    out2 = jax.block_until_ready(polynomial_forward(x2, coeffs))
    ref2 = _reference(x2, coeffs)
    assert out2.shape == (B2, F2)
    assert jnp.allclose(out2, ref2, atol=1e-5, rtol=1e-5)

    # Case 3: force the feature-tiled fallback (tiny synthetic budget) so the
    # per-degree lane-block path is also exercised on device.
    B3, F3 = 4, 512
    x3 = jax.random.normal(kx3, (B3, D, F3), dtype=jnp.float32)
    out3 = jax.block_until_ready(
        polynomial_forward(x3, coeffs, x_block_budget_bytes=1 << 14)
    )
    ref3 = _reference(x3, coeffs)
    assert out3.shape == (B3, F3)
    assert jnp.allclose(out3, ref3, atol=1e-5, rtol=1e-5)

    print("KERNEL_OK")
</pallas_src>

<mosaic_0001>
module attributes {stable_mosaic.version = 11 : i64} {
  func.func @_poly_kernel_flat(%arg0: i32, %arg1: memref<8xf32, #tpu.memory_space<smem>>, %arg2: memref<2x1024xf32, #tpu.memory_space<vmem>>, %arg3: memref<2x128xf32, #tpu.memory_space<vmem>>) attributes {dimension_semantics = [#tpu.dimension_semantics<parallel>], iteration_bounds = array<i64: 1>, scalar_prefetch = 1 : i64, scratch_operands = 0 : i64, tpu.core_type = #tpu.core_type<tc>, window_params = [{transform_indices = @transform_0, window_bounds = array<i64: 2, 1024>}, {transform_indices = @transform_1, window_bounds = array<i64: 2, 128>}]} {
    %c0 = arith.constant 0 : index
    %c0_0 = arith.constant 0 : index
    %0 = vector.load %arg2[%c0, %c0_0] : memref<2x1024xf32, #tpu.memory_space<vmem>>, vector<2x128xf32>
    %c0_1 = arith.constant 0 : index
    %1 = memref.load %arg1[%c0_1] : memref<8xf32, #tpu.memory_space<smem>>
    %2 = vector.broadcast %1 : f32 to vector<2x128xf32>
    %3 = arith.mulf %0, %2 : vector<2x128xf32>
    %c0_2 = arith.constant 0 : index
    %c128 = arith.constant 128 : index
    %4 = vector.load %arg2[%c0_2, %c128] : memref<2x1024xf32, #tpu.memory_space<vmem>>, vector<2x128xf32>
    %c1 = arith.constant 1 : index
    %5 = memref.load %arg1[%c1] : memref<8xf32, #tpu.memory_space<smem>>
    %6 = vector.broadcast %5 : f32 to vector<2x128xf32>
    %7 = arith.mulf %4, %6 : vector<2x128xf32>
    %8 = arith.addf %3, %7 : vector<2x128xf32>
    %c0_3 = arith.constant 0 : index
    %c256 = arith.constant 256 : index
    %9 = vector.load %arg2[%c0_3, %c256] : memref<2x1024xf32, #tpu.memory_space<vmem>>, vector<2x128xf32>
    %c2 = arith.constant 2 : index
    %10 = memref.load %arg1[%c2] : memref<8xf32, #tpu.memory_space<smem>>
    %11 = vector.broadcast %10 : f32 to vector<2x128xf32>
    %12 = arith.mulf %9, %11 : vector<2x128xf32>
    %13 = arith.addf %8, %12 : vector<2x128xf32>
    %c0_4 = arith.constant 0 : index
    %c384 = arith.constant 384 : index
    %14 = vector.load %arg2[%c0_4, %c384] : memref<2x1024xf32, #tpu.memory_space<vmem>>, vector<2x128xf32>
    %c3 = arith.constant 3 : index
    %15 = memref.load %arg1[%c3] : memref<8xf32, #tpu.memory_space<smem>>
    %16 = vector.broadcast %15 : f32 to vector<2x128xf32>
    %17 = arith.mulf %14, %16 : vector<2x128xf32>
    %18 = arith.addf %13, %17 : vector<2x128xf32>
    %c0_5 = arith.constant 0 : index
    %c512 = arith.constant 512 : index
    %19 = vector.load %arg2[%c0_5, %c512] : memref<2x1024xf32, #tpu.memory_space<vmem>>, vector<2x128xf32>
    %c4 = arith.constant 4 : index
    %20 = memref.load %arg1[%c4] : memref<8xf32, #tpu.memory_space<smem>>
    %21 = vector.broadcast %20 : f32 to vector<2x128xf32>
    %22 = arith.mulf %19, %21 : vector<2x128xf32>
    %23 = arith.addf %18, %22 : vector<2x128xf32>
    %c0_6 = arith.constant 0 : index
    %c640 = arith.constant 640 : index
    %24 = vector.load %arg2[%c0_6, %c640] : memref<2x1024xf32, #tpu.memory_space<vmem>>, vector<2x128xf32>
    %c5 = arith.constant 5 : index
    %25 = memref.load %arg1[%c5] : memref<8xf32, #tpu.memory_space<smem>>
    %26 = vector.broadcast %25 : f32 to vector<2x128xf32>
    %27 = arith.mulf %24, %26 : vector<2x128xf32>
    %28 = arith.addf %23, %27 : vector<2x128xf32>
    %c0_7 = arith.constant 0 : index
    %c768 = arith.constant 768 : index
    %29 = vector.load %arg2[%c0_7, %c768] : memref<2x1024xf32, #tpu.memory_space<vmem>>, vector<2x128xf32>
    %c6 = arith.constant 6 : index
    %30 = memref.load %arg1[%c6] : memref<8xf32, #tpu.memory_space<smem>>
    %31 = vector.broadcast %30 : f32 to vector<2x128xf32>
    %32 = arith.mulf %29, %31 : vector<2x128xf32>
    %33 = arith.addf %28, %32 : vector<2x128xf32>
    %c0_8 = arith.constant 0 : index
    %c896 = arith.constant 896 : index
    %34 = vector.load %arg2[%c0_8, %c896] : memref<2x1024xf32, #tpu.memory_space<vmem>>, vector<2x128xf32>
    %c7 = arith.constant 7 : index
    %35 = memref.load %arg1[%c7] : memref<8xf32, #tpu.memory_space<smem>>
    %36 = vector.broadcast %35 : f32 to vector<2x128xf32>
    %37 = arith.mulf %34, %36 : vector<2x128xf32>
    %38 = arith.addf %33, %37 : vector<2x128xf32>
    %c0_9 = arith.constant 0 : index
    %c0_10 = arith.constant 0 : index
    %39 = vector.load %arg3[%c0_9, %c0_10] : memref<2x128xf32, #tpu.memory_space<vmem>>, vector<2x128xf32>
    tpu.vector_store %arg3[%c0_9, %c0_10], %38 {strides = array<i32>} : memref<2x128xf32, #tpu.memory_space<vmem>>, vector<2x128xf32>,
    return
  }
  func.func @transform_0(%arg0: i32, %arg1: memref<8xf32, #tpu.memory_space<smem>>) -> (i32, i32) {
    %c0_i32 = arith.constant 0 : i32
    %c0_i32_0 = arith.constant 0 : i32
    return %arg0, %c0_i32 : i32, i32
  }
  func.func @transform_1(%arg0: i32, %arg1: memref<8xf32, #tpu.memory_space<smem>>) -> (i32, i32) {
    %c0_i32 = arith.constant 0 : i32
    %c0_i32_0 = arith.constant 0 : i32
    return %arg0, %c0_i32 : i32, i32
  }
}

</mosaic_0001>

<bundles_post_ra>
// kernel: tpu_custom_call.1
= control target key start
LH: loop header
LB: loop body
LE: loop exit
PB: predicated region body
PF: predicated region fallthrough
CT: control target
= control target key end

     0   :  { %s205_s0 = inlined_call_operand.hbm [shape: f32[8], index: 0, kind: input, shape index: {}]   ;;  %s206_s1 = inlined_call_operand.hbm [shape: f32[2,1024], index: 1, kind: input, shape index: {}]   ;;  %s207_s2 = inlined_call_operand.hbm [shape: f32[2,128], index: 2, kind: output, shape index: {}]  }
   0x1   :  { %s91_s11 = scalar_lea.hbm %s205_s0, 16 }
   0x2   :  { %p92_p0 = scmp.ne.s32.totalorder %s205_s0, %s91_s11  ;;  %p95_p1 = scmp.lt.u32.totalorder %s91_s11, %s205_s0 }
   0x4   :  { %p97_p2 = pnand %p95_p1, %p92_p0 }
   0x6   :  { %100 = shalt.err (!%p97_p2)  }
   0x7   :  { %s151_s16 = smov [#allocation3]  }
   0x8   :  { %8 = dma.hbm_to_smem %s205_s0, 16, %s151_s16, [#allocation2] }
   0x9   :  { %145 = dma.done.wait [#allocation2], 16 }
   0xa   :  { %146 = vsyncadd [#allocation2], 4294967280 }
   0xb   :  { %10 = sfence }
   0xc   :  { %11 = vsyncpa [#allocation5], 0 }
   0xd   :  { %12 = vsyncpa [#allocation6], 0  ;;  %s152_s19 = smov [#allocation4]   ;;  %s101_s23 = scalar_lea.hbm %s206_s1, 256 }
   0xe   :  { %s19_s20 = sshll.u32 %s152_s19, 4  ;;  %p102_p3 = scmp.ne.s32.totalorder %s206_s1, %s101_s23  ;;  %s20_s20 = int_to_ptr.vmem [resolvable:$true] %s19_s20 }
   0xf   :  { %p105_p4 = scmp.lt.u32.totalorder %s101_s23, %s206_s1 }
  0x11   :  { %p107_p5 = pnand %p105_p4, %p102_p3 }
  0x13   :  { %110 = shalt.err (!%p107_p5)
}
  0x14   :  { %s111_s0 = scalar_lea.vmem %s20_s20, 256  ;;  %p116_p7 = scmp.lt.s32.totalorder %s20_s20, %s20_s20 }
  0x15   :  { %p112_p6 = scmp.ne.s32.totalorder %s20_s20, %s111_s0  ;;  %p117_p8 = scmp.lt.s32.totalorder %s111_s0, %s111_s0 }
  0x17   :  { %p118_p9 = por %p117_p8, %p116_p7 }
  0x19   :  { %p119_p10 = pnand %p118_p9, %p112_p6 }
  0x1b   :  { %122 = shalt.err (!%p119_p10)
}
  0x1c   :  { %22 = dma.hbm_to_vmem [thread:$0]  %s206_s1, 256, %s20_s20, [#allocation5]  }
  0x1d   :  { %147 = dma.done.wait [#allocation5], 256  }
  0x1e   :  { %148 = vsyncadd [#allocation5], 4294967040  ;;  %s27_s30 = sld [smem:[#allocation3]]  ;;  %s81_s3 = sld [smem:[#allocation3 + $0x1]]  ;;  %v26_v0 = vld [vmem:[#allocation4] sm:$0x3] }
  0x1f   :  { %s82_s4 = sld [smem:[#allocation3 + $0x2]]  ;;  %s83_s5 = sld [smem:[#allocation3 + $0x3]]  ;;  %v30_v2 = vld [vmem:[#allocation4 + $0x2] sm:$0x3]  ;;  %v35_v4 = vld [vmem:[#allocation4 + $0x4] sm:$0x3] }
  0x20   :  { %s84_s6 = sld [smem:[#allocation3 + $0x4]]  ;;  %s85_s7 = sld [smem:[#allocation3 + $0x5]]  ;;  %v40_v8 = vld [vmem:[#allocation4 + $0x6] sm:$0x3]  ;;  %v45_v11 = vld [vmem:[#allocation4 + $0x8] sm:$0x3] }
  0x21   :  { %s86_s8 = sld [smem:[#allocation3 + $0x6]]  ;;  %s87_s9 = sld [smem:[#allocation3 + $0x7]]  ;;  %v50_v15 = vld [vmem:[#allocation4 + $0xa] sm:$0x3]  ;;  %v55_v19 = vld [vmem:[#allocation4 + $0xc] sm:$0x3] }
  0x22   :  { %v60_v23 = vld [vmem:[#allocation4 + $0xe] sm:$0x3]  ;;  %s153_s1 = smov [#allocation7]  }
  0x23   :  { %s72_s10 = sshll.u32 %s153_s1, 4  ;;  %s73_s10 = int_to_ptr.vmem [resolvable:$true] %s72_s10 }
  0x24   :  { %v28_v1 = vstv %s27_s30  ;;  %v32_v3 = vstv %s81_s3  ;;  %s123_s11 = scalar_lea.vmem %s73_s10, 32  ;;  %p128_p12 = scmp.lt.s32.totalorder %s73_s10, %s73_s10 }
  0x25   :  { %v29_v5 = vmul.f32 %v28_v1, %v26_v0  ;;  %v33_v6 = vmul.f32 %v32_v3, %v30_v2  ;;  %v37_v7 = vstv %s82_s4  ;;  %v42_v9 = vstv %s83_s5  ;;  %p124_p11 = scmp.ne.s32.totalorder %s73_s10, %s123_s11  ;;  %p129_p13 = scmp.lt.s32.totalorder %s123_s11, %s123_s11 }
  0x26   :  { %v38_v10 = vmul.f32 %v37_v7, %v35_v4  ;;  %v47_v12 = vstv %s84_s6  ;;  %v43_v14 = vmul.f32 %v42_v9, %v40_v8  ;;  %v52_v16 = vstv %s85_s7 }
  0x27   :  { %v34_v13 = vadd.f32 %v33_v6, %v29_v5  ;;  %v48_v18 = vmul.f32 %v47_v12, %v45_v11  ;;  %v57_v20 = vstv %s86_s8  ;;  %v53_v22 = vmul.f32 %v52_v16, %v50_v15  ;;  %p130_p0 = por %p129_p13, %p128_p12 }
  0x28   :  { %v62_v24 = vstv %s87_s9  ;;  %v58_v26 = vmul.f32 %v57_v20, %v55_v19 }
  0x29   :  { %v39_v17 = vadd.f32 %v38_v10, %v34_v13  ;;  %v63_v28 = vmul.f32 %v62_v24, %v60_v23  ;;  %p131_p1 = pnand %p130_p0, %p124_p11 }
  0x2b   :  { %v44_v21 = vadd.f32 %v43_v14, %v39_v17 }
  0x2d   :  { %v49_v25 = vadd.f32 %v48_v18, %v44_v21 }
  0x2f   :  { %v54_v27 = vadd.f32 %v53_v22, %v49_v25 }
  0x31   :  { %v59_v29 = vadd.f32 %v58_v26, %v54_v27 }
  0x33   :  { %v64_v30 = vadd.f32 %v63_v28, %v59_v29 }
  0x35   :  { %65 = vst [vmem:[#allocation7] sm:$0x3] %v64_v30 }
  0x36   :  { %134 = shalt.err (!%p131_p1)
}
  0x37   :  { %s135_s14 = scalar_lea.hbm %s207_s2, 32 }
  0x38   :  { %p136_p2 = scmp.ne.s32.totalorder %s207_s2, %s135_s14  ;;  %p139_p3 = scmp.lt.u32.totalorder %s135_s14, %s207_s2 }
  0x3a   :  { %p141_p4 = pnand %p139_p3, %p136_p2 }
  0x3c   :  { %144 = shalt.err (!%p141_p4)
}
  0x3d   :  { %75 = dma.vmem_to_hbm [thread:$0]  %s73_s10, 32, %s207_s2, [#allocation6]  }
  0x3e   :  { %149 = dma.done.wait [#allocation6], 32  }
  0x3f   :  { %150 = vsyncadd [#allocation6], 4294967264 }
  0x40   :  { %79 = vsyncpa [#allocation5], 1 }
  0x41   :  { %80 = vsyncpa [#allocation6], 1 }

</bundles_post_ra>
